<compile_context>
chip_gen: v7x
topology: tpu7x:2x2x1
jax: 0.10.0
libtpu: 0.0.40
codegen_flags: <defaults>
</compile_context>

<pallas_src>
import functools

import numpy as np

import jax
import jax.numpy as jnp
from jax.experimental import pallas as pl
from jax.experimental.pallas import tpu as pltpu

_CONV_C = 16  # conv channel count, fixed by the module


# ------------------------------ helpers ------------------------------

def _round_up(x, m):
    return (x + m - 1) // m * m


def _full_spec(shape):
    nd = len(shape)
    return pl.BlockSpec(shape, lambda i, _nd=nd: (0,) * _nd)


def _param_layout(n_channel, n_band):
    """Row offsets of every parameter block inside the packed (rows, width) slab."""
    N = 2 * n_channel
    HW = N * N
    C = _CONV_C
    NB = n_band
    NB2 = 2 * n_band
    CN = C * N
    assert NB2 <= 128 and N <= 128, "packing assumes 2*n_band <= 128 and 2*n_channel <= 128"
    width = _round_up(max(128, CN, 9 * C + 1), 128)

    L = {}
    r = 0
    L["wq"] = r; r += HW                      # fc_c weight, re-laid-out to (HW, C*N)
    r = _round_up(r, 8)
    L["w1"] = r; r += C                       # conv1 taps (C, 9) + bias col 9
    L["w2"] = r; r += C                       # conv2 taps (C, 144) + bias col 144
    L["g1w"] = r; r += NB                     # gcn1 W^T (NB, NB2)
    r = _round_up(r, 8)
    L["f1a"] = r; r += N                      # fc1_w[:, :N]^T   (N, N)
    r = _round_up(r, 8)
    L["f1b"] = r; r += N                      # fc1_w[:, N:]^T   (N, N)
    r = _round_up(r, 8)
    L["f2"] = r; r += N                       # fc2_w^T          (N, n_channel)
    r = _round_up(r, 8)
    L["rows"] = r; r += 9                     # 9 single-row params (biases etc.)
    L["nrows"] = _round_up(r, 8)
    L["width"] = width
    return L


def _probe_roll_convention():
    """One-time probe (outside jit): does pltpu.roll match np.roll's direction?"""
    def k(x_ref, o_ref):
        o_ref[...] = pltpu.roll(x_ref[...], 1, axis=1)

    x = jnp.arange(256, dtype=jnp.float32).reshape(1, 256)
    y = pl.pallas_call(
        k,
        out_shape=jax.ShapeDtypeStruct((1, 256), jnp.float32),
        grid=(1,),
        in_specs=[_full_spec((1, 256))],
        out_specs=_full_spec((1, 256)),
    )(x)
    # np.roll([0..255], 1)[0] == 255
    return bool(np.asarray(jax.block_until_ready(y))[0, 0] == 255.0)


# ------------------------------ fused Pallas kernel ------------------------------

def _fused_forward_kernel(x1_ref, x2_ref, p_ref, o_ref, *,
                          n_channel, n_band, L, np_roll):
    f32 = jnp.float32
    N = 2 * n_channel
    HW = N * N
    C = _CONV_C
    NB = n_band
    NB2 = 2 * n_band
    CN = C * N
    nc = n_channel
    rr = L["rows"]

    def shift_lanes(v, amount, size):
        """w[..., i] = v[..., (i + amount) % size] (direction fixed by the probe)."""
        if amount % size == 0:
            return v
        s = (-amount) % size if np_roll else amount % size
        return pltpu.roll(v, s, axis=1)

    # ------------------------------- graph branch -------------------------------
    # The module's edge_index is the complete graph; with GCNConv's default self
    # loops A_norm = ones(N,N)/N, so aggregation == mean over nodes (exact).
    xbar = jnp.mean(x1_ref[...], axis=0, keepdims=True)                       # (1, NB)
    g1w = p_ref[L["g1w"]:L["g1w"] + NB, 0:NB2]                                # (NB, NB2)
    g1b = p_ref[rr + 0:rr + 1, 0:NB2]                                         # (1, NB2)
    h1 = jnp.maximum(jnp.dot(xbar, g1w, preferred_element_type=f32) + g1b, 0.0)
    # F.dropout: identity in eval mode.  # TODO(synk): training-mode dropout not implemented.
    g2w = p_ref[rr + 1:rr + 2, 0:NB2]                                         # (1, NB2)
    g2b = p_ref[rr + 8:rr + 9, 0:1]                                           # (1, 1)
    g2 = jnp.maximum(jnp.sum(h1 * g2w, axis=1, keepdims=True) + g2b, 0.0)     # (1, 1)
    # x1.view(N,-1).T == g2 * ones(1,N)  ->  fc_g collapses to g2 * rowsum(W) + b.
    fcg_ws = p_ref[rr + 2:rr + 3, 0:N]                                        # (1, N)
    fcg_b = p_ref[rr + 3:rr + 4, 0:N]                                         # (1, N)
    xg = jnp.maximum(g2 * fcg_ws + fcg_b, 0.0)                                # (1, N)

    # ------------------- conv branch: channel-first (C, HW) layout -------------------
    lane = jax.lax.broadcasted_iota(jnp.int32, (1, HW), 1)
    ypos = lane // N
    xpos = lane % N
    m_yl = (ypos >= 1).astype(f32)          # valid when dy == -1
    m_yr = (ypos <= N - 2).astype(f32)      # valid when dy == +1
    m_xl = (xpos >= 1).astype(f32)          # valid when dx == -1
    m_xr = (xpos <= N - 2).astype(f32)      # valid when dx == +1

    tap_masks = []
    for k in range(9):
        dy, dx = k // 3 - 1, k % 3 - 1
        m = None
        for cond, msk in ((dy == -1, m_yl), (dy == 1, m_yr),
                          (dx == -1, m_xl), (dx == 1, m_xr)):
            if cond:
                m = msk if m is None else m * msk
        tap_masks.append(m)

    def tap(act, k):
        # tap value at output position p is act[:, p + dy*N + dx], zero outside image.
        dy, dx = k // 3 - 1, k % 3 - 1
        t = shift_lanes(act, dy * N + dx, HW)
        m = tap_masks[k]
        return t if m is None else t * m

    # conv1: 1 -> 16 channels, 9 VPU outer-product FMAs (K=1 taps, no MXU pushes).
    img = x2_ref[...]                                                          # (1, HW)
    w1 = p_ref[L["w1"]:L["w1"] + C, 0:16]                                      # cols 0..8 taps, 9 bias
    acc1 = None
    for k in range(9):
        term = w1[:, k:k + 1] * tap(img, k)                                    # (C, HW)
        acc1 = term if acc1 is None else acc1 + term
    a1 = jnp.maximum(acc1 + w1[:, 9:10], 0.0)                                  # (C, HW)

    # conv2: 16 -> 16 channels as ONE K=144 MXU matmul over the stacked taps.
    pieces = [tap(a1, k) for k in range(9)]
    s2 = jnp.concatenate(pieces, axis=0)                                       # (9*C, HW)
    w2 = p_ref[L["w2"]:L["w2"] + C, 0:9 * C]                                   # (C, 9*C)
    b2 = p_ref[L["w2"]:L["w2"] + C, 9 * C:9 * C + 1]                           # (C, 1)
    a2 = jnp.maximum(jnp.dot(w2, s2, preferred_element_type=f32) + b2, 0.0)    # (C, HW)

    # fc_c: one (C,HW)@(HW,C*N) matmul; keep the block-diagonal (channel-matched)
    # terms and fold the C lane-blocks of width N down to lanes [0, N).
    wq = p_ref[L["wq"]:L["wq"] + HW, 0:CN]                                     # (HW, C*N)
    B = jnp.dot(a2, wq, preferred_element_type=f32)                            # (C, C*N)
    sub_i = jax.lax.broadcasted_iota(jnp.int32, (C, CN), 0)
    lane_i = jax.lax.broadcasted_iota(jnp.int32, (C, CN), 1)
    B = jnp.where(lane_i // N == sub_i, B, 0.0)
    blocks = C
    while blocks > 1:
        s = (blocks // 2) * N
        B = B + shift_lanes(B, s, CN)
        blocks //= 2
    fcc_b = p_ref[rr + 4:rr + 5, 0:N]                                          # (1, N)
    xc = jnp.maximum(jnp.sum(B[:, 0:N], axis=0, keepdims=True) + fcc_b, 0.0)   # (1, N)

    # ----------------------------------- head -----------------------------------
    # fc1 on cat([xg, xc]) via a row-split of the (pre-transposed) weight.
    f1a = p_ref[L["f1a"]:L["f1a"] + N, 0:N]
    f1b = p_ref[L["f1b"]:L["f1b"] + N, 0:N]
    b1 = p_ref[rr + 5:rr + 6, 0:N]
    t = (jnp.dot(xg, f1a, preferred_element_type=f32)
         + jnp.dot(xc, f1b, preferred_element_type=f32))
    t = jnp.maximum(t + b1, 0.0)                                               # (1, N)
    f2 = p_ref[L["f2"]:L["f2"] + N, 0:nc]
    b2r = p_ref[rr + 6:rr + 7, 0:nc]
    t = jnp.maximum(jnp.dot(t, f2, preferred_element_type=f32) + b2r, 0.0)     # (1, nc)
    w3 = p_ref[rr + 7:rr + 8, 0:nc]
    b3 = p_ref[rr + 8:rr + 9, 1:2]
    out = jnp.sum(t * w3, axis=1, keepdims=True) + b3                          # (1, 1)
    o_ref[...] = out.astype(o_ref.dtype)


# ---------------------------------- wrapper ----------------------------------

def model_forward(packed, x1, x2, *, n_channel, n_band, layout, np_roll):
    """Single fused pallas_call for the whole forward pass. Returns (1, 1) f32."""
    N = 2 * n_channel
    HW = N * N
    x1f = x1.astype(jnp.float32)
    x2f = x2.reshape(1, HW).astype(jnp.float32)
    kernel = functools.partial(_fused_forward_kernel, n_channel=n_channel,
                               n_band=n_band, L=layout, np_roll=np_roll)
    return pl.pallas_call(
        kernel,
        out_shape=jax.ShapeDtypeStruct((1, 1), jnp.float32),
        grid=(1,),
        in_specs=[_full_spec(x1f.shape), _full_spec(x2f.shape), _full_spec(packed.shape)],
        out_specs=_full_spec((1, 1)),
        compiler_params=pltpu.CompilerParams(dimension_semantics=("arbitrary",)),
    )(x1f, x2f, packed)


# ------------------------------ parameters ------------------------------

def init_params(n_channel, n_band, key):
    """Parameters in the PyTorch `Model` layouts."""
    N = 2 * n_channel
    ks = jax.random.split(key, 18)
    s = 0.1
    f32 = jnp.float32
    return {
        "gcn1_w": s * jax.random.normal(ks[0], (2 * n_band, n_band), f32),
        "gcn1_b": s * jax.random.normal(ks[1], (2 * n_band,), f32),
        "gcn2_w": s * jax.random.normal(ks[2], (1, 2 * n_band), f32),
        "gcn2_b": s * jax.random.normal(ks[3], (1,), f32),
        "fc_g_w": s * jax.random.normal(ks[4], (N, N), f32),
        "fc_g_b": s * jax.random.normal(ks[5], (N,), f32),
        "conv1_w": s * jax.random.normal(ks[6], (16, 1, 3, 3), f32),
        "conv1_b": s * jax.random.normal(ks[7], (16,), f32),
        "conv2_w": s * jax.random.normal(ks[8], (16, 16, 3, 3), f32),
        "conv2_b": s * jax.random.normal(ks[9], (16,), f32),
        "fc_c_w": s * jax.random.normal(ks[10], (N, 16 * N * N), f32),
        "fc_c_b": s * jax.random.normal(ks[11], (N,), f32),
        "fc1_w": s * jax.random.normal(ks[12], (N, 2 * N), f32),
        "fc1_b": s * jax.random.normal(ks[13], (N,), f32),
        "fc2_w": s * jax.random.normal(ks[14], (n_channel, N), f32),
        "fc2_b": s * jax.random.normal(ks[15], (n_channel,), f32),
        "fc3_w": s * jax.random.normal(ks[16], (1, n_channel), f32),
        "fc3_b": s * jax.random.normal(ks[17], (1,), f32),
    }


def prepare_params(p, n_channel, n_band):
    """Pack all torch-layout params into ONE contiguous f32 slab (single DMA)."""
    N = 2 * n_channel
    HW = N * N
    C = _CONV_C
    NB = n_band
    NB2 = 2 * n_band
    CN = C * N
    L = _param_layout(n_channel, n_band)
    P = np.zeros((L["nrows"], L["width"]), np.float32)

    # fc_c weight (N, C*HW) -> Wq (HW, C*N):  Wq[p, c*N+n] = W[n, c*HW+p]
    wq = np.asarray(p["fc_c_w"], np.float32).reshape(N, C, HW).transpose(2, 1, 0).reshape(HW, CN)
    P[L["wq"]:L["wq"] + HW, :CN] = wq

    # conv1 (16,1,3,3): cols 0..8 = tap k = 3*ky+kx, col 9 = bias
    P[L["w1"]:L["w1"] + C, :9] = np.asarray(p["conv1_w"], np.float32).reshape(C, 9)
    P[L["w1"]:L["w1"] + C, 9] = np.asarray(p["conv1_b"], np.float32)

    # conv2 (16,16,3,3) -> (16, 144) with column index (3*ky+kx)*16 + cin; col 144 = bias
    w2 = np.asarray(p["conv2_w"], np.float32).transpose(0, 2, 3, 1).reshape(C, 9 * C)
    P[L["w2"]:L["w2"] + C, :9 * C] = w2
    P[L["w2"]:L["w2"] + C, 9 * C] = np.asarray(p["conv2_b"], np.float32)

    # gcn1 weight transposed for row matmul
    P[L["g1w"]:L["g1w"] + NB, :NB2] = np.asarray(p["gcn1_w"], np.float32).T

    # head weights, transposed (row-oriented matmuls)
    f1 = np.asarray(p["fc1_w"], np.float32)
    P[L["f1a"]:L["f1a"] + N, :N] = f1[:, :N].T
    P[L["f1b"]:L["f1b"] + N, :N] = f1[:, N:].T
    P[L["f2"]:L["f2"] + N, :n_channel] = np.asarray(p["fc2_w"], np.float32).T

    rr = L["rows"]
    P[rr + 0, :NB2] = np.asarray(p["gcn1_b"], np.float32)
    P[rr + 1, :NB2] = np.asarray(p["gcn2_w"], np.float32).reshape(NB2)
    P[rr + 2, :N] = np.asarray(p["fc_g_w"], np.float32).sum(axis=1)   # rowsum(W) for fc_g
    P[rr + 3, :N] = np.asarray(p["fc_g_b"], np.float32)
    P[rr + 4, :N] = np.asarray(p["fc_c_b"], np.float32)
    P[rr + 5, :N] = np.asarray(p["fc1_b"], np.float32)
    P[rr + 6, :n_channel] = np.asarray(p["fc2_b"], np.float32)
    P[rr + 7, :n_channel] = np.asarray(p["fc3_w"], np.float32).reshape(n_channel)
    P[rr + 8, 0] = float(np.asarray(p["gcn2_b"]).reshape(-1)[0])
    P[rr + 8, 1] = float(np.asarray(p["fc3_b"]).reshape(-1)[0])
    return jnp.asarray(P), L


# --------------------------- pure-JAX reference (validation) ---------------------------

def reference_forward(p, x1, x2, n_channel):
    """Non-Pallas reference of the PyTorch forward (eval mode)."""
    N = 2 * n_channel
    hi = jax.lax.Precision.HIGHEST
    a_norm = jnp.ones((N, N), jnp.float32) / N   # complete graph + self loops
    h = jnp.dot(x1, p["gcn1_w"].T, precision=hi)
    h = jax.nn.relu(jnp.dot(a_norm, h, precision=hi) + p["gcn1_b"][None, :])
    h = jnp.dot(h, p["gcn2_w"].T, precision=hi)
    h = jax.nn.relu(jnp.dot(a_norm, h, precision=hi) + p["gcn2_b"][None, :])
    xg = h.reshape(N, -1).T
    xg = jax.nn.relu(jnp.dot(xg, p["fc_g_w"].T, precision=hi) + p["fc_g_b"][None, :])
    img = x2[None, None, :, :]
    c1 = jax.lax.conv_general_dilated(img, p["conv1_w"], (1, 1), ((1, 1), (1, 1)),
                                      dimension_numbers=("NCHW", "OIHW", "NCHW"), precision=hi)
    c1 = jax.nn.relu(c1 + p["conv1_b"][None, :, None, None])
    c2 = jax.lax.conv_general_dilated(c1, p["conv2_w"], (1, 1), ((1, 1), (1, 1)),
                                      dimension_numbers=("NCHW", "OIHW", "NCHW"), precision=hi)
    c2 = jax.nn.relu(c2 + p["conv2_b"][None, :, None, None])
    xc = jax.nn.relu(jnp.dot(c2.reshape(1, -1), p["fc_c_w"].T, precision=hi) + p["fc_c_b"][None, :])
    x = jnp.concatenate([xg, xc], axis=1)
    x = jax.nn.relu(jnp.dot(x, p["fc1_w"].T, precision=hi) + p["fc1_b"][None, :])
    x = jax.nn.relu(jnp.dot(x, p["fc2_w"].T, precision=hi) + p["fc2_b"][None, :])
    return jnp.dot(x, p["fc3_w"].T, precision=hi) + p["fc3_b"][None, :]


# ------------------------------------- main -------------------------------------

if __name__ == "__main__":
    n_channel = 8
    n_band = 16
    N = 2 * n_channel

    key = jax.random.PRNGKey(0)
    k_params, k_x1, k_x2 = jax.random.split(key, 3)

    raw_params = init_params(n_channel, n_band, k_params)
    packed, layout = prepare_params(raw_params, n_channel, n_band)

    x1 = jax.random.normal(k_x1, (N, n_band), jnp.float32)   # node features (2*n_channel, n_band)
    x2 = jax.random.normal(k_x2, (N, N), jnp.float32)        # image-like input (H = W = 2*n_channel)

    np_roll = _probe_roll_convention()   # one-time trace-time probe of pltpu.roll direction

    fwd = jax.jit(functools.partial(model_forward, n_channel=n_channel, n_band=n_band,
                                    layout=layout, np_roll=np_roll))
    out = jax.block_until_ready(fwd(packed, x1, x2))
    assert out.shape == (1, 1) and out.dtype == jnp.float32

    # Validate the fused kernel against a pure-JAX reference of the PyTorch forward.
    ref = jax.block_until_ready(reference_forward(raw_params, x1, x2, n_channel))
    np.testing.assert_allclose(np.asarray(out), np.asarray(ref), rtol=5e-2, atol=5e-3)

    print("KERNEL_OK")
</pallas_src>

<mosaic_0001>
module attributes {stable_mosaic.version = 11 : i64} {
  func.func @k(%arg0: i32, %arg1: memref<1x256xf32, #tpu.memory_space<vmem>>, %arg2: memref<1x256xf32, #tpu.memory_space<vmem>>) attributes {dimension_semantics = [#tpu.dimension_semantics<arbitrary>], iteration_bounds = array<i64: 1>, scalar_prefetch = 0 : i64, scratch_operands = 0 : i64, tpu.core_type = #tpu.core_type<tc>, window_params = [{pipeline_mode = #tpu.pipeline_mode<synchronous>, transform_indices = @transform_0, window_bounds = array<i64: 1, 256>}, {pipeline_mode = #tpu.pipeline_mode<synchronous>, transform_indices = @transform_1, window_bounds = array<i64: 1, 256>}]} {
    %c0 = arith.constant 0 : index
    %c0_0 = arith.constant 0 : index
    %0 = vector.load %arg1[%c0, %c0_0] : memref<1x256xf32, #tpu.memory_space<vmem>>, vector<1x256xf32>
    %c1_i32 = arith.constant 1 : i32
    %1 = tpu.dynamic_rotate %0 by %c1_i32 dim 1 : vector<1x256xf32>, i32 -> vector<1x256xf32>
    %c0_1 = arith.constant 0 : index
    %c0_2 = arith.constant 0 : index
    %2 = vector.load %arg2[%c0_1, %c0_2] : memref<1x256xf32, #tpu.memory_space<vmem>>, vector<1x256xf32>
    tpu.vector_store %arg2[%c0_1, %c0_2], %1 {strides = array<i32>} : memref<1x256xf32, #tpu.memory_space<vmem>>, vector<1x256xf32>,
    return
  }
  func.func @transform_0(%arg0: i32) -> (i32, i32) {
    %c0_i32 = arith.constant 0 : i32
    %c0_i32_0 = arith.constant 0 : i32
    %c0_i32_1 = arith.constant 0 : i32
    return %c0_i32, %c0_i32_0 : i32, i32
  }
  func.func @transform_1(%arg0: i32) -> (i32, i32) {
    %c0_i32 = arith.constant 0 : i32
    %c0_i32_0 = arith.constant 0 : i32
    %c0_i32_1 = arith.constant 0 : i32
    return %c0_i32, %c0_i32_0 : i32, i32
  }
}

</mosaic_0001>

<bundles_post_ra>
// kernel: tpu_custom_call.1
= control target key start
LH: loop header
LB: loop body
LE: loop exit
PB: predicated region body
PF: predicated region fallthrough
CT: control target
= control target key end

     0   :  { %6 = vsyncpa [#allocation3], 0  ;;  %s170_s0 = inlined_call_operand.hbm [shape: f32[1,256], index: 0, kind: input, shape index: {}]   ;;  %s171_s1 = inlined_call_operand.hbm [shape: f32[1,256], index: 1, kind: output, shape index: {}]  }
   0x1   :  { %7 = vsyncpa [#allocation4], 0  ;;  %s132_s6 = smov [#allocation2]   ;;  %s84_s10 = scalar_lea.hbm %s170_s0, 32 }
   0x2   :  { %s14_s7 = sshll.u32 %s132_s6, 4  ;;  %p85_p0 = scmp.ne.s32.totalorder %s170_s0, %s84_s10  ;;  %s15_s7 = int_to_ptr.vmem [resolvable:$true] %s14_s7 }
   0x3   :  { %p88_p1 = scmp.lt.u32.totalorder %s84_s10, %s170_s0 }
   0x5   :  { %p90_p2 = pnand %p88_p1, %p85_p0 }
   0x7   :  { %93 = shalt.err (!%p90_p2)
}
   0x8   :  { %s94_s15 = scalar_lea.vmem %s15_s7, 32  ;;  %p99_p4 = scmp.lt.s32.totalorder %s15_s7, %s15_s7 }
   0x9   :  { %p95_p3 = scmp.ne.s32.totalorder %s15_s7, %s94_s15  ;;  %p100_p5 = scmp.lt.s32.totalorder %s94_s15, %s94_s15 }
   0xb   :  { %p101_p6 = por %p100_p5, %p99_p4 }
   0xd   :  { %p102_p7 = pnand %p101_p6, %p95_p3 }
   0xf   :  { %105 = shalt.err (!%p102_p7)
}
  0x10   :  { %17 = dma.hbm_to_vmem [thread:$0]  %s170_s0, 32, %s15_s7, [#allocation3]  }
  0x11   :  { %128 = dma.done.wait [#allocation3], 32  }
  0x12   :  { %129 = vsyncadd [#allocation3], 4294967264  ;;  %v23_v0 = vlaneseq  ;;  %v21_v4 = vld [vmem:[#allocation2] sm:$0x3]  ;;  %s133_s18 = smov 1   ;;  %s135_s0 = smov [#allocation5]  }
  0x13   :  { %v134_v7 = vmov 1966171168   ;;  %s71_s19 = sshll.u32 %s135_s0, 4  ;;  %s72_s19 = int_to_ptr.vmem [resolvable:$true] %s71_s19 }
  0x14   :  { %v24_v1 = vshrl.u32 %v23_v0, 7  ;;  %v46_v8 = vunpack.c.l.s4 %v134_v7  ;;  %v38_v9 = vand.u32 127, %v23_v0  ;;  %vm62_vm1 = vcmp.lt.s32.totalorder %v23_v0, 256  ;;  %s106_s20 = scalar_lea.vmem %s72_s19, 32  ;;  %p111_p9 = scmp.lt.s32.totalorder %s72_s19, %s72_s19 }
  0x15   :  { %p107_p8 = scmp.ne.s32.totalorder %s72_s19, %s106_s20  ;;  %p112_p10 = scmp.lt.s32.totalorder %s106_s20, %s106_s20 }
  0x16   :  { %v25_v2 = vsub.s32 0, %v24_v1  ;;  %v29_v3 = vsub.s32 1, %v24_v1  ;;  %v47_v11 = vunpack.c.0.s8 %v46_v8  ;;  %vm39_vm0 = vcmp.lt.s32.totalorder %v38_v9, 1 }
  0x17   :  { %p113_p11 = por %p112_p10, %p111_p9 }
  0x18   :  { %v26_v5 = vrot.slane %v21_v4, %v25_v2  ;;  %v30_v6 = vrot.slane %v21_v4, %v29_v3  ;;  %v50_v12 = vsub.s32 %v47_v11, %v24_v1 }
  0x19   :  { %p114_p12 = pnand %p113_p11, %p107_p8 }
  0x1a   :  { %33 = vrot.lane.b32.xlu0 %v26_v5, %s133_s18 }
  0x1e   :  { %35 = vrot.lane.b32.xlu0 %v30_v6, %s133_s18 }
  0x8c   :  { %v34_v10 = vpop.permute.xlu0 %33 }
  0x90   :  { %v36_v13 = vpop.permute.xlu0 %35 }
  0x91   :  { %v40_v14 = vsel %vm39_vm0, %v34_v10, %v36_v13  ;;  %v41_v15 = vsel %vm39_vm0, %v36_v13, %v34_v10 }
  0x92   :  { %v44_v16 = vcombine.low %v41_v15, %v40_v14 }
  0x94   :  { %v51_v17 = vrot.slane %v44_v16, %v50_v12 }
  0x96   :  { %v58_v18 = vrot.slane %v51_v17, %v50_v12 }
  0x98   :  { %64 = vst.msk [vmem:[#allocation5] sm:$0x3] %vm62_vm1, %v58_v18 }
  0x99   :  { %117 = shalt.err (!%p114_p12)
}
  0x9a   :  { %s118_s23 = scalar_lea.hbm %s171_s1, 32 }
  0x9b   :  { %p119_p13 = scmp.ne.s32.totalorder %s171_s1, %s118_s23  ;;  %p122_p0 = scmp.lt.u32.totalorder %s118_s23, %s171_s1 }
  0x9d   :  { %p124_p1 = pnand %p122_p0, %p119_p13 }
  0x9f   :  { %127 = shalt.err (!%p124_p1)
}
  0xa0   :  { %74 = dma.vmem_to_hbm [thread:$0]  %s72_s19, 32, %s171_s1, [#allocation4]  }
  0xa1   :  { %130 = dma.done.wait [#allocation4], 32  }
  0xa2   :  { %131 = vsyncadd [#allocation4], 4294967264 }
  0xa3   :  { %78 = vsyncpa [#allocation3], 1 }
  0xa4   :  { %79 = vsyncpa [#allocation4], 1 }

</bundles_post_ra>
